<compile_context>
chip_gen: v7x
topology: tpu7x:2x2x1
jax: 0.10.0
libtpu: 0.0.40
codegen_flags: <defaults>
</compile_context>

<pallas_src>
import math
import functools

import jax
import jax.numpy as jnp
from jax.experimental import pallas as pl
from jax.experimental.pallas import tpu as pltpu


def _round_up(x, m):
    return ((x + m - 1) // m) * m


# Finite mask value: avoids exp(-inf - -inf) = NaN in the online-softmax rescale.
_NEG_INF = -1e30


def _flash_attn_kernel(q_ref, k_ref, v_ref, o_ref, m_ref, l_ref, acc_ref, *,
                       inv_scale, causal, offset, tq, tk, lk_valid):
    qi = pl.program_id(1)
    kv = pl.program_id(2)

    @pl.when(kv == 0)
    def _init():
        m_ref[...] = jnp.full_like(m_ref, _NEG_INF)
        l_ref[...] = jnp.zeros_like(l_ref)
        acc_ref[...] = jnp.zeros_like(acc_ref)

    def _compute():
        # Fold 1/sqrt(d_key) into Q: scales (TQ, Dk) instead of (TQ, TK).
        q = q_ref[0] * inv_scale                     # (TQ, Dk), native dtype
        k = k_ref[0]                                 # (TK, Dk)
        v = v_ref[0]                                 # (TK, Dv)

        # Q @ K^T without transposing K: contract the last dim of both operands.
        s = jax.lax.dot_general(
            q, k, (((1,), (1,)), ((), ())),
            preferred_element_type=jnp.float32)      # (TQ, TK) f32

        if causal:
            row = jax.lax.broadcasted_iota(jnp.int32, s.shape, 0) + qi * tq
            col = jax.lax.broadcasted_iota(jnp.int32, s.shape, 1) + kv * tk
            s = jnp.where(col <= row + offset, s, _NEG_INF)
        if lk_valid is not None:
            # Mask zero-padded key columns in the last KV tile.
            col = jax.lax.broadcasted_iota(jnp.int32, s.shape, 1) + kv * tk
            s = jnp.where(col < lk_valid, s, _NEG_INF)

        # Online (streaming) softmax update.
        m_prev = m_ref[...]
        m_new = jnp.maximum(m_prev, jnp.max(s, axis=-1, keepdims=True))
        alpha = jnp.exp(m_prev - m_new)
        p = jnp.exp(s - m_new)
        l_ref[...] = alpha * l_ref[...] + jnp.sum(p, axis=-1, keepdims=True)
        acc_ref[...] = alpha * acc_ref[...] + jnp.dot(
            p.astype(v.dtype), v, preferred_element_type=jnp.float32)
        m_ref[...] = m_new

    if causal:
        # Skip KV tiles that lie entirely above the causal diagonal.
        pl.when(kv * tk <= qi * tq + (tq - 1) + offset)(_compute)
    else:
        _compute()

    @pl.when(kv == pl.num_programs(2) - 1)
    def _finalize():
        l = l_ref[...]
        l = jnp.where(l == 0.0, 1.0, l)              # guard fully-masked rows
        o_ref[0] = (acc_ref[...] * pl.reciprocal(l, approx=True)).astype(o_ref.dtype)


def attention(query, key, value, d_key, drop_ratio=0.0, causal=False,
              *, block_q=128, block_k=512):
    """Pallas equivalent of matchbox Attention.forward.

    query: [B, Lq, Dk], key: [B, Lk, Dk], value: [B, Lk, Dv] -> [B, Lq, Dv]
    """
    # TODO(synk): nn.Dropout is stochastic in train mode; inference semantics
    # (identity) are implemented here.
    del drop_ratio

    B, Lq, Dk = query.shape
    _, Lk, _ = key.shape
    _, _, Dv = value.shape
    inv_scale = 1.0 / math.sqrt(d_key)

    # Tile sizes: sublane-aligned (multiple of 8), clamped to the problem size.
    tq = min(block_q, _round_up(Lq, 8))
    tk = min(block_k, _round_up(Lk, 8))

    # Pad features to the 128-lane width (lane-dense Q/K/V/output) and
    # sequences to tile multiples.
    dk_p = _round_up(Dk, 128)
    dv_p = _round_up(Dv, 128)
    lq_p = _round_up(Lq, tq)
    lk_p = _round_up(Lk, tk)

    qp = jnp.pad(query, ((0, 0), (0, lq_p - Lq), (0, dk_p - Dk)))
    kp = jnp.pad(key,   ((0, 0), (0, lk_p - Lk), (0, dk_p - Dk)))
    vp = jnp.pad(value, ((0, 0), (0, lk_p - Lk), (0, dv_p - Dv)))

    grid = (B, lq_p // tq, lk_p // tk)

    kernel = functools.partial(
        _flash_attn_kernel,
        inv_scale=inv_scale,
        causal=causal,
        offset=Lk - Lq,           # standard convention when Lq != Lk
        tq=tq, tk=tk,
        lk_valid=(Lk if lk_p != Lk else None),
    )

    out = pl.pallas_call(
        kernel,
        out_shape=jax.ShapeDtypeStruct((B, lq_p, dv_p), query.dtype),
        grid_spec=pltpu.PrefetchScalarGridSpec(
            num_scalar_prefetch=0,
            grid=grid,
            in_specs=[
                pl.BlockSpec((1, tq, dk_p), lambda b, qi, kv: (b, qi, 0)),
                pl.BlockSpec((1, tk, dk_p), lambda b, qi, kv: (b, kv, 0)),
                pl.BlockSpec((1, tk, dv_p), lambda b, qi, kv: (b, kv, 0)),
            ],
            out_specs=pl.BlockSpec((1, tq, dv_p), lambda b, qi, kv: (b, qi, 0)),
            scratch_shapes=[
                pltpu.VMEM((tq, 1), jnp.float32),      # m: running row max
                pltpu.VMEM((tq, 1), jnp.float32),      # l: running denominator
                pltpu.VMEM((tq, dv_p), jnp.float32),   # acc: running PV accumulator
            ],
        ),
        compiler_params=pltpu.CompilerParams(
            dimension_semantics=("parallel", "parallel", "arbitrary"),
            vmem_limit_bytes=32 * 1024 * 1024,
        ),
    )(qp, kp, vp)

    return out[:, :Lq, :Dv]


def _reference(query, key, value, d_key, causal=False):
    s = jnp.einsum("bqd,bkd->bqk", query, key) / math.sqrt(d_key)
    if causal:
        Lq, Lk = s.shape[1], s.shape[2]
        row = jnp.arange(Lq)[:, None]
        col = jnp.arange(Lk)[None, :]
        s = jnp.where(col <= row + (Lk - Lq), s, -jnp.inf)
    p = jax.nn.softmax(s, axis=-1)
    return jnp.einsum("bqk,bkd->bqd", p, value)


if __name__ == "__main__":
    # Primary test: shapes implied by the module (small, deterministic).
    B, Lq, Lk, Dk, Dv = 2, 8, 8, 32, 32
    k0 = jax.random.PRNGKey(0)
    kq, kk_, kv_ = jax.random.split(k0, 3)
    query = jax.random.normal(kq, (B, Lq, Dk), dtype=jnp.float32)
    key = jax.random.normal(kk_, (B, Lk, Dk), dtype=jnp.float32)
    value = jax.random.normal(kv_, (B, Lk, Dv), dtype=jnp.float32)

    out = attention(query, key, value, d_key=Dk, drop_ratio=0.1, causal=False)
    out = jax.block_until_ready(out)
    ref = _reference(query, key, value, Dk, causal=False)
    assert out.shape == (B, Lq, Dv)
    assert jnp.allclose(out, ref, atol=1e-2, rtol=1e-2), "mismatch (non-causal)"

    # Causal path (exercises tile skipping + iota mask).
    out_c = jax.block_until_ready(
        attention(query, key, value, d_key=Dk, drop_ratio=0.0, causal=True))
    ref_c = _reference(query, key, value, Dk, causal=True)
    assert jnp.allclose(out_c, ref_c, atol=1e-2, rtol=1e-2), "mismatch (causal)"

    # Ragged shapes: exercises sequence/feature padding and the key-padding mask.
    B2, Lq2, Lk2, Dk2, Dv2 = 1, 12, 20, 48, 40
    k1, k2, k3 = jax.random.split(jax.random.PRNGKey(1), 3)
    q2 = jax.random.normal(k1, (B2, Lq2, Dk2), dtype=jnp.float32)
    k2a = jax.random.normal(k2, (B2, Lk2, Dk2), dtype=jnp.float32)
    v2 = jax.random.normal(k3, (B2, Lk2, Dv2), dtype=jnp.float32)
    out2 = jax.block_until_ready(attention(q2, k2a, v2, d_key=Dk2))
    ref2 = _reference(q2, k2a, v2, Dk2)
    assert out2.shape == (B2, Lq2, Dv2)
    assert jnp.allclose(out2, ref2, atol=1e-2, rtol=1e-2), "mismatch (padded)"

    print("KERNEL_OK")
</pallas_src>

<mosaic_0001>
module attributes {stable_mosaic.version = 11 : i64} {
  func.func @_flash_attn_kernel(%arg0: i32, %arg1: i32, %arg2: i32, %arg3: memref<1x8x128xf32, #tpu.memory_space<vmem>>, %arg4: memref<1x8x128xf32, #tpu.memory_space<vmem>>, %arg5: memref<1x8x128xf32, #tpu.memory_space<vmem>>, %arg6: memref<1x8x128xf32, #tpu.memory_space<vmem>>, %arg7: memref<8x1xf32, #tpu.memory_space<vmem>>, %arg8: memref<8x1xf32, #tpu.memory_space<vmem>>, %arg9: memref<8x128xf32, #tpu.memory_space<vmem>>) attributes {dimension_semantics = [#tpu.dimension_semantics<parallel>, #tpu.dimension_semantics<parallel>, #tpu.dimension_semantics<arbitrary>], iteration_bounds = array<i64: 2, 1, 1>, scalar_prefetch = 0 : i64, scratch_operands = 3 : i64, tpu.core_type = #tpu.core_type<tc>, window_params = [{transform_indices = @transform_0, window_bounds = array<i64: 1, 8, 128>}, {transform_indices = @transform_1, window_bounds = array<i64: 1, 8, 128>}, {transform_indices = @transform_2, window_bounds = array<i64: 1, 8, 128>}, {transform_indices = @transform_3, window_bounds = array<i64: 1, 8, 128>}]} {
    %c0_i32 = arith.constant 0 : i32
    %0 = arith.cmpi eq, %arg2, %c0_i32 : i32
    %1 = arith.extui %0 : i1 to i32
    %c0_i32_0 = arith.constant 0 : i32
    %2 = arith.cmpi ne, %1, %c0_i32_0 : i32
    scf.if %2 {
      %cst_27 = arith.constant -1.000000e+30 : f32
      %37 = vector.broadcast %cst_27 : f32 to vector<8x1xf32>
      %c0_28 = arith.constant 0 : index
      %c0_29 = arith.constant 0 : index
      %38 = vector.load %arg7[%c0_28, %c0_29] : memref<8x1xf32, #tpu.memory_space<vmem>>, vector<8x1xf32>
      tpu.vector_store %arg7[%c0_28, %c0_29], %37 {strides = array<i32>} : memref<8x1xf32, #tpu.memory_space<vmem>>, vector<8x1xf32>,
      %cst_30 = arith.constant 0.000000e+00 : f32
      %39 = vector.broadcast %cst_30 : f32 to vector<8x1xf32>
      %c0_31 = arith.constant 0 : index
      %c0_32 = arith.constant 0 : index
      %40 = vector.load %arg8[%c0_31, %c0_32] : memref<8x1xf32, #tpu.memory_space<vmem>>, vector<8x1xf32>
      tpu.vector_store %arg8[%c0_31, %c0_32], %39 {strides = array<i32>} : memref<8x1xf32, #tpu.memory_space<vmem>>, vector<8x1xf32>,
      %cst_33 = arith.constant 0.000000e+00 : f32
      %41 = vector.broadcast %cst_33 : f32 to vector<8x128xf32>
      %c0_34 = arith.constant 0 : index
      %c0_35 = arith.constant 0 : index
      %42 = vector.load %arg9[%c0_34, %c0_35] : memref<8x128xf32, #tpu.memory_space<vmem>>, vector<8x128xf32>
      tpu.vector_store %arg9[%c0_34, %c0_35], %41 {strides = array<i32>} : memref<8x128xf32, #tpu.memory_space<vmem>>, vector<8x128xf32>,
    } else {
    }
    %c0 = arith.constant 0 : index
    %c0_1 = arith.constant 0 : index
    %c0_2 = arith.constant 0 : index
    %3 = vector.load %arg3[%c0, %c0_1, %c0_2] : memref<1x8x128xf32, #tpu.memory_space<vmem>>, vector<1x8x128xf32>
    %4 = vector.shape_cast %3 : vector<1x8x128xf32> to vector<8x128xf32>
    %cst = arith.constant 0.176776692 : f32
    %5 = vector.broadcast %cst : f32 to vector<8x128xf32>
    %6 = arith.mulf %4, %5 : vector<8x128xf32>
    %c0_3 = arith.constant 0 : index
    %c0_4 = arith.constant 0 : index
    %c0_5 = arith.constant 0 : index
    %7 = vector.load %arg4[%c0_3, %c0_4, %c0_5] : memref<1x8x128xf32, #tpu.memory_space<vmem>>, vector<1x8x128xf32>
    %8 = vector.shape_cast %7 : vector<1x8x128xf32> to vector<8x128xf32>
    %c0_6 = arith.constant 0 : index
    %c0_7 = arith.constant 0 : index
    %c0_8 = arith.constant 0 : index
    %9 = vector.load %arg5[%c0_6, %c0_7, %c0_8] : memref<1x8x128xf32, #tpu.memory_space<vmem>>, vector<1x8x128xf32>
    %10 = vector.shape_cast %9 : vector<1x8x128xf32> to vector<8x128xf32>
    %cst_9 = arith.constant dense<0.000000e+00> : vector<8x8xf32>
    %11 = tpu.matmul %6, %8, %cst_9 {dimension_numbers = #tpu.dot_dimension_numbers<[1], [1], [0], [0], [0, 0, 1, 0], [], []>} : vector<8x128xf32>, vector<8x128xf32>, vector<8x8xf32> -> vector<8x8xf32>
    %c0_10 = arith.constant 0 : index
    %c0_11 = arith.constant 0 : index
    %12 = vector.load %arg7[%c0_10, %c0_11] : memref<8x1xf32, #tpu.memory_space<vmem>>, vector<8x1xf32>
    %cst_12 = arith.constant dense<0xFF800000> : vector<8xf32>
    %13 = vector.multi_reduction <maximumf>, %11, %cst_12 [1] : vector<8x8xf32> to vector<8xf32>
    %14 = vector.shape_cast %13 : vector<8xf32> to vector<8x1xf32>
    %15 = arith.maximumf %12, %14 : vector<8x1xf32>
    %16 = arith.subf %12, %15 : vector<8x1xf32>
    %17 = math.exp %16 : vector<8x1xf32>
    %18 = vector.broadcast %15 : vector<8x1xf32> to vector<8x8xf32>
    %19 = arith.subf %11, %18 : vector<8x8xf32>
    %20 = math.exp %19 : vector<8x8xf32>
    %c0_13 = arith.constant 0 : index
    %c0_14 = arith.constant 0 : index
    %21 = vector.load %arg8[%c0_13, %c0_14] : memref<8x1xf32, #tpu.memory_space<vmem>>, vector<8x1xf32>
    %22 = arith.mulf %17, %21 : vector<8x1xf32>
    %cst_15 = arith.constant dense<0.000000e+00> : vector<8xf32>
    %23 = vector.multi_reduction <add>, %20, %cst_15 [1] : vector<8x8xf32> to vector<8xf32>
    %24 = vector.shape_cast %23 : vector<8xf32> to vector<8x1xf32>
    %25 = arith.addf %22, %24 : vector<8x1xf32>
    %c0_16 = arith.constant 0 : index
    %c0_17 = arith.constant 0 : index
    %26 = vector.load %arg8[%c0_16, %c0_17] : memref<8x1xf32, #tpu.memory_space<vmem>>, vector<8x1xf32>
    tpu.vector_store %arg8[%c0_16, %c0_17], %25 {strides = array<i32>} : memref<8x1xf32, #tpu.memory_space<vmem>>, vector<8x1xf32>,
    %c0_18 = arith.constant 0 : index
    %c0_19 = arith.constant 0 : index
    %27 = vector.load %arg9[%c0_18, %c0_19] : memref<8x128xf32, #tpu.memory_space<vmem>>, vector<8x128xf32>
    %28 = vector.broadcast %17 : vector<8x1xf32> to vector<8x128xf32>
    %29 = arith.mulf %28, %27 : vector<8x128xf32>
    %cst_20 = arith.constant dense<0.000000e+00> : vector<8x128xf32>
    %30 = tpu.matmul %20, %10, %cst_20 {dimension_numbers = #tpu.dot_dimension_numbers<[1], [0], [0], [1], [0, 0, 1, 1], [], []>} : vector<8x8xf32>, vector<8x128xf32>, vector<8x128xf32> -> vector<8x128xf32>
    %31 = arith.addf %29, %30 : vector<8x128xf32>
    %c0_21 = arith.constant 0 : index
    %c0_22 = arith.constant 0 : index
    %32 = vector.load %arg9[%c0_21, %c0_22] : memref<8x128xf32, #tpu.memory_space<vmem>>, vector<8x128xf32>
    tpu.vector_store %arg9[%c0_21, %c0_22], %31 {strides = array<i32>} : memref<8x128xf32, #tpu.memory_space<vmem>>, vector<8x128xf32>,
    %c0_23 = arith.constant 0 : index
    %c0_24 = arith.constant 0 : index
    %33 = vector.load %arg7[%c0_23, %c0_24] : memref<8x1xf32, #tpu.memory_space<vmem>>, vector<8x1xf32>
    tpu.vector_store %arg7[%c0_23, %c0_24], %15 {strides = array<i32>} : memref<8x1xf32, #tpu.memory_space<vmem>>, vector<8x1xf32>,
    %c0_i32_25 = arith.constant 0 : i32
    %34 = arith.cmpi eq, %arg2, %c0_i32_25 : i32
    %35 = arith.extui %34 : i1 to i32
    %c0_i32_26 = arith.constant 0 : i32
    %36 = arith.cmpi ne, %35, %c0_i32_26 : i32
    scf.if %36 {
      %c0_27 = arith.constant 0 : index
      %c0_28 = arith.constant 0 : index
      %37 = vector.load %arg8[%c0_27, %c0_28] : memref<8x1xf32, #tpu.memory_space<vmem>>, vector<8x1xf32>
      %cst_29 = arith.constant 0.000000e+00 : f32
      %38 = vector.broadcast %cst_29 : f32 to vector<8x1xf32>
      %39 = arith.cmpf oeq, %37, %38 : vector<8x1xf32>
      %cst_30 = arith.constant 1.000000e+00 : f32
      %40 = vector.broadcast %cst_30 : f32 to vector<8x1xf32>
      %41 = arith.select %39, %40, %37 : vector<8x1xi1>, vector<8x1xf32>
      %c0_31 = arith.constant 0 : index
      %c0_32 = arith.constant 0 : index
      %42 = vector.load %arg9[%c0_31, %c0_32] : memref<8x128xf32, #tpu.memory_space<vmem>>, vector<8x128xf32>
      %43 = tpu.reciprocal %41 {approx = true} : vector<8x1xf32> -> vector<8x1xf32>
      %44 = vector.broadcast %43 : vector<8x1xf32> to vector<8x128xf32>
      %45 = arith.mulf %42, %44 : vector<8x128xf32>
      %c0_33 = arith.constant 0 : index
      %c0_34 = arith.constant 0 : index
      %c0_35 = arith.constant 0 : index
      %46 = vector.load %arg6[%c0_33, %c0_34, %c0_35] : memref<1x8x128xf32, #tpu.memory_space<vmem>>, vector<1x8x128xf32>
      %47 = vector.shape_cast %46 : vector<1x8x128xf32> to vector<8x128xf32>
      %48 = vector.shape_cast %45 : vector<8x128xf32> to vector<1x8x128xf32>
      tpu.vector_store %arg6[%c0_33, %c0_34, %c0_35], %48 {strides = array<i32>} : memref<1x8x128xf32, #tpu.memory_space<vmem>>, vector<1x8x128xf32>,
    } else {
    }
    return
  }
  func.func @transform_0(%arg0: i32, %arg1: i32, %arg2: i32) -> (i32, i32, i32) {
    %c0_i32 = arith.constant 0 : i32
    %c0_i32_0 = arith.constant 0 : i32
    return %arg0, %arg1, %c0_i32 : i32, i32, i32
  }
  func.func @transform_1(%arg0: i32, %arg1: i32, %arg2: i32) -> (i32, i32, i32) {
    %c0_i32 = arith.constant 0 : i32
    %c0_i32_0 = arith.constant 0 : i32
    return %arg0, %arg2, %c0_i32 : i32, i32, i32
  }
  func.func @transform_2(%arg0: i32, %arg1: i32, %arg2: i32) -> (i32, i32, i32) {
    %c0_i32 = arith.constant 0 : i32
    %c0_i32_0 = arith.constant 0 : i32
    return %arg0, %arg2, %c0_i32 : i32, i32, i32
  }
  func.func @transform_3(%arg0: i32, %arg1: i32, %arg2: i32) -> (i32, i32, i32) {
    %c0_i32 = arith.constant 0 : i32
    %c0_i32_0 = arith.constant 0 : i32
    return %arg0, %arg1, %c0_i32 : i32, i32, i32
  }
}

</mosaic_0001>

<bundles_post_ra>
// kernel: tpu_custom_call.1
= control target key start
LH: loop header
LB: loop body
LE: loop exit
PB: predicated region body
PF: predicated region fallthrough
CT: control target
= control target key end

     0   :  { %s1230_s0 = inlined_call_operand.hbm [shape: f32[2,8,128], index: 0, kind: input, shape index: {}]   ;;  %s1231_s1 = inlined_call_operand.hbm [shape: f32[2,8,128], index: 1, kind: input, shape index: {}]   ;;  %s1232_s2 = inlined_call_operand.hbm [shape: f32[2,8,128], index: 2, kind: input, shape index: {}]   ;;  %s1233_s3 = inlined_call_operand.hbm [shape: f32[2,8,128], index: 3, kind: output, shape index: {}]  }
   0x1   :  { %1239 = sst [smem:[#allocation18_spill]] %s1231_s1 }
   0x2   :  { %8 = vsyncpa [#allocation6], 0 }
   0x3   :  { %10 = vsyncpa [#allocation6 + $0x1], 0 }
   0x4   :  { %11 = vsyncpa [#allocation9], 0 }
   0x5   :  { %13 = vsyncpa [#allocation9 + $0x1], 0 }
   0x6   :  { %14 = vsyncpa [#allocation7], 0 }
   0x7   :  { %16 = vsyncpa [#allocation7 + $0x1], 0  ;;  %s959_s12 = smov 0   ;;  %s961_s13 = smov 0  }
   0x8   :  { %s963_s14 = smov 0   ;;  %s965_s15 = smov 0  }
   0x9   :  { %s967_s16 = smov 0   ;;  %s969_s17 = smov 0  }
   0xa LB: > { %1240 = sst [smem:[#allocation15_spill]] %s925_s16  ;;  %s990_s18 = sadd.s32 4294967295, %s929_s17   ;;  %s929_s17 = sphi %s969_s17, %s22_s17   ;;  %s925_s16 = sphi %s967_s16, %s1261_s16   ;;  %s921_s15 = sphi %s965_s15, %s1260_s15   ;;  %s917_s14 = sphi %s963_s14, %s1264_s14   ;;  %s913_s13 = sphi %s961_s13, %s1263_s13   ;;  %s909_s12 = sphi %s959_s12, %s1262_s12  }
   0xb   : > { %s636_s19 = sadd.s32 4294967294, %s929_s17   ;;  %s41_s20 = sadd.s32 1, %s925_s16 }
   0xc   : > { %s50_s21 = sadd.s32 1, %s917_s14  ;;  %p43_p0 = scmp.ge.s32.totalorder %s41_s20, 2 }
   0xd   : > { %p57_p1 = scmp.ne.s32.totalorder %s917_s14, %s913_s13  ;;  %p58_p2 = scmp.eq.s32.totalorder %s929_s17, 0 }
   0xe   : > { %p63_p3 = scmp.ne.s32.totalorder %s913_s13, %s909_s12  ;;  %s1266_s20 = smov (%p43_p0, %s41_s20), 0 }
   0xf   : > { %1241 = sst [smem:[#allocation16_spill]] %s1266_s20  ;;  %p1002_p4 = por %p58_p2, %p57_p1 }
  0x10   : > { %p64_p5 = scmp.eq.s32.totalorder %s990_s18, 0  ;;  %s45_s23 = ssub.s32 %s925_s16, %s1266_s20 }
  0x11   : > { %p145_p6 = scmp.eq.s32.totalorder %s990_s18, 1  ;;  %p48_p7 = scmp.eq.s32.totalorder %s45_s23, 0 }
  0x12   : > { %p1010_p8 = por %p64_p5, %p63_p3  ;;  %p151_p10 = scmp.eq.s32.totalorder %s636_s19, 1 }
  0x13   : > { %p1014_p9 = por %p145_p6, %p57_p1  ;;  %p691_p13 = scmp.lt.s32.totalorder %s929_s17, 2 }
  0x14   : > { %s1243_s24 = scalar_select %p1010_p8, 1, 0 }
  0x15   : > { %s1244_s25 = scalar_select %p1014_p9, 1, 0 }
  0x16   : > { %s1019_s26 = scalar_select %p48_p7, %s917_s14, %s50_s21  }
  0x17   : > { %p1021_p11 = por %p151_p10, %p63_p3  ;;  %s171_s28 = sand.u32 1, %s917_s14  }
  0x18   : > { %1245 = sst [smem:[#allocation17_spill]] %s1019_s26  ;;  %s1030_s29 = sshll.u32 %s171_s28, 3 }
  0x19   : > { %s1246_s27 = scalar_select %p1021_p11, 1, 0 }
  0x1a   : > { %s1033_s30 = sshll.u32 %s925_s16, 7  ;;  %p1037_p0 = pnand %p691_p13, %p1002_p4 }
  0x1b   : > { %s190_s5 = sand.u32 1, %s929_s17   ;;  %s1248_s1 = sld [smem:[#allocation18_spill]] }
  0x1c   : > { %s1247_s4 = scalar_select %p1037_p0, 1, 0 }
  0x1d   : > { %s194_s9 = scalar_lea.vmem [#allocation8], %s1030_s29  ;;  %s1053_s11 = scalar_lea.sflag [#allocation9], %s190_s5 }
  0x1e   : > { %s202_s10 = sshll.u32 %s194_s9, 4  ;;  %p1059_p4 = pneg %p1037_p0  ;;  %s1050_s10 = int_to_ptr.vmem [resolvable:$true] %s202_s10 }
  0x21   : > { %s1046_s8 = scalar_lea.hbm %s1248_s1, %s1033_s30  ;;  %s758_s6 = scalar_lea.hbm %s1248_s1, 256 }
  0x22   : > { %s753_s19 = scalar_lea.hbm %s1046_s8, 128  ;;  %p759_p7 = scmp.lt.u32.totalorder %s1046_s8, %s1248_s1 }
  0x23   : > { %p754_p3 = scmp.ne.s32.totalorder %s1046_s8, %s753_s19  ;;  %p760_p10 = scmp.lt.u32.totalorder %s758_s6, %s753_s19 }
  0x24   : > { %p762_p12 = scmp.lt.u32.totalorder %s753_s19, %s1046_s8 }
  0x25   : > { %p756_p5 = pnand %p1059_p4, %p754_p3  ;;  %p761_p13 = por %p760_p10, %p759_p7 }
  0x27   : > { %p757_p6 = pneg %p756_p5  ;;  %p763_p1 = por %p762_p12, %p761_p13 }
  0x29   : > { %p764_p2 = pnand %p763_p1, %p757_p6 }
  0x2b   : > { %767 = shalt.err (!%p764_p2)
}
  0x2c   : > { %s768_s5 = scalar_lea.vmem %s1050_s10, 128  ;;  %s931_s22 = smov [#allocation8]  }
  0x2d   : > { %p769_p3 = scmp.ne.s32.totalorder %s1050_s10, %s768_s5  ;;  %s773_s23 = sshll.u32 %s931_s22, 4  ;;  %s774_s23 = int_to_ptr.vmem [resolvable:$false] %s773_s23 }
  0x2e   : > { %s775_s7 = scalar_lea.vmem %s774_s23, 256  ;;  %p776_p9 = scmp.lt.s32.totalorder %s1050_s10, %s774_s23 }
  0x2f   : > { %p771_p5 = pnand %p769_p3, %p1059_p4  ;;  %p777_p8 = scmp.lt.s32.totalorder %s775_s7, %s768_s5 }
  0x31   : > { %p772_p11 = pneg %p771_p5  ;;  %p778_p7 = por %p777_p8, %p776_p9 }
  0x33   : > { %p779_p10 = pnand %p778_p7, %p772_p11 }
  0x35   : > { %782 = shalt.err (!%p779_p10)
}
  0x36   : > { %683 = dma.hbm_to_vmem [thread:$0]  (!%p1037_p0), %s1046_s8, 128, %s1050_s10, %s1053_s11  }
  0x37   : > { %p1250_p12 = scmp.lt.s32.totalorder %s929_s17, 3  ;;  %p1251_p1 = scmp.ge.s32.totalorder %s929_s17, 1 }
  0x38   : > { %s1095_s5 = scalar_lea.hbm %s1230_s0, %s1033_s30  ;;  %s175_s22 = scalar_lea.vmem [#allocation5], %s1030_s29 }
  0x39   : > { %p1087_p2 = pnand %p1251_p1, %p1250_p12  ;;  %s183_s23 = sshll.u32 %s175_s22, 4  ;;  %s1098_s23 = int_to_ptr.vmem [resolvable:$true] %s183_s23 }
  0x3a   : > { %s1104_s7 = scalar_lea.hbm %s1232_s2, %s1033_s30  ;;  %s172_s1 = scalar_lea.sflag [#allocation6], %s171_s28 }
  0x3b   : > { %s1252_s19 = scalar_select %p1087_p2, 1, 0 }
  0x3c   : > { %s783_s20 = scalar_lea.hbm %s1095_s5, 128  ;;  %s788_s16 = scalar_lea.hbm %s1230_s0, 256 }
  0x3d   : > { %p784_p8 = scmp.ne.s32.totalorder %s1095_s5, %s783_s20  ;;  %p789_p6 = scmp.lt.u32.totalorder %s1095_s5, %s1230_s0 }
  0x3e   : > { %p790_p13 = scmp.lt.u32.totalorder %s788_s16, %s783_s20  ;;  %p792_p5 = scmp.lt.u32.totalorder %s783_s20, %s1095_s5 }
  0x3f   : > { %p786_p9 = pnand %p784_p8, %p1059_p4 }
  0x40   : > { %p791_p3 = por %p790_p13, %p789_p6 }
  0x41   : > { %p787_p11 = pneg %p786_p9 }
  0x42   : > { %p793_p7 = por %p792_p5, %p791_p3 }
  0x44   : > { %p794_p10 = pnand %p793_p7, %p787_p11 }
  0x46   : > { %797 = shalt.err (!%p794_p10)
}
  0x47   : > { %s798_s28 = scalar_lea.vmem %s1098_s23, 128  ;;  %s932_s30 = smov [#allocation5]  }
  0x48   : > { %p799_p12 = scmp.ne.s32.totalorder %s1098_s23, %s798_s28  ;;  %s803_s8 = sshll.u32 %s932_s30, 4  ;;  %s804_s8 = int_to_ptr.vmem [resolvable:$false] %s803_s8 }
  0x49   : > { %s805_s26 = scalar_lea.vmem %s804_s8, 256  ;;  %p806_p9 = scmp.lt.s32.totalorder %s1098_s23, %s804_s8 }
  0x4a   : > { %p801_p1 = pnand %p799_p12, %p1059_p4  ;;  %p807_p2 = scmp.lt.s32.totalorder %s805_s26, %s798_s28 }
  0x4c   : > { %p802_p8 = pneg %p801_p1  ;;  %p808_p6 = por %p807_p2, %p806_p9 }
  0x4e   : > { %p809_p13 = pnand %p808_p6, %p802_p8 }
  0x50   : > { %812 = shalt.err (!%p809_p13)
}
  0x51   : > { %680 = dma.hbm_to_vmem [thread:$0]  (!%p1037_p0), %s1095_s5, 128, %s1098_s23, %s172_s1  }
  0x52   : > { %s213_s16 = scalar_lea.vmem [#allocation10], %s1030_s29  ;;  %s813_s10 = scalar_lea.hbm %s1104_s7, 128 }
  0x53   : > { %s221_s20 = sshll.u32 %s213_s16, 4  ;;  %p814_p11 = scmp.ne.s32.totalorder %s1104_s7, %s813_s10  ;;  %s222_s20 = int_to_ptr.vmem [resolvable:$true] %s221_s20 }
  0x54   : > { %s818_s22 = scalar_lea.hbm %s1232_s2, 256  ;;  %p819_p5 = scmp.lt.u32.totalorder %s1104_s7, %s1232_s2 }
  0x55   : > { %p816_p2 = pnand %p814_p11, %p1059_p4  ;;  %p820_p7 = scmp.lt.u32.totalorder %s818_s22, %s813_s10 }
  0x56   : > { %p822_p12 = scmp.lt.u32.totalorder %s813_s10, %s1104_s7 }
  0x57   : > { %p817_p3 = pneg %p816_p2  ;;  %p821_p10 = por %p820_p7, %p819_p5 }
  0x59   : > { %p823_p1 = por %p822_p12, %p821_p10 }
  0x5b   : > { %p824_p8 = pnand %p823_p1, %p817_p3 }
  0x5d   : > { %827 = shalt.err (!%p824_p8)
}
  0x5e   : > { %s828_s1 = scalar_lea.vmem %s222_s20, 128  ;;  %s933_s29 = smov [#allocation10]  }
  0x5f   : > { %p829_p9 = scmp.ne.s32.totalorder %s222_s20, %s828_s1  ;;  %s833_s5 = sshll.u32 %s933_s29, 4  ;;  %s834_s5 = int_to_ptr.vmem [resolvable:$false] %s833_s5 }
  0x60   : > { %s835_s23 = scalar_lea.vmem %s834_s5, 256  ;;  %p836_p11 = scmp.lt.s32.totalorder %s222_s20, %s834_s5 }
  0x61   : > { %p831_p6 = pnand %p829_p9, %p1059_p4  ;;  %p837_p2 = scmp.lt.s32.totalorder %s835_s23, %s828_s1 }
  0x63   : > { %p832_p13 = pneg %p831_p6  ;;  %p838_p0 = por %p837_p2, %p836_p11 }
  0x65   : > { %p839_p5 = pnand %p838_p0, %p832_p13 }
  0x67   : > { %842 = shalt.err (!%p839_p5)
}
  0x68   : > { %p1253_p7 = scmp.ne.s32.totalorder %s1247_s4, 0  ;;  %p1254_p3 = scmp.ne.s32.totalorder %s1252_s19, 0 }
  0x69   : > { %s1151_s21 = sand.u32 (!%p1254_p3), 1, %s913_s13   ;;  %p1255_p0 = scmp.ne.s32.totalorder (!%p1254_p3), %s1243_s24, 0 }
  0x6a   : > { %686 = dma.hbm_to_vmem [thread:$0]  (!%p1253_p7), %s1104_s7, 128, %s222_s20, %s1053_s11  }
  0x6b   : > { %230 = sbr.rel (%p1254_p3) target bundleno = 934 (0x3a6), region = 32  ;;  %s1154_s8 = sshll.u32 (!%p1254_p3), %s1151_s21, 3 }
  0x6c   : > { %s233_s26 = scalar_lea.sflag (!%p1254_p3), [#allocation6], %s1151_s21  ;;  %s236_s16 = scalar_lea.vmem (!%p1254_p3), [#allocation5], %s1154_s8 }
  0x72   : > { %896 = dma.done.wait (%p1255_p0), %s233_s26, 128  }
  0x73   : > { %898 = vsyncadd (%p1255_p0), %s233_s26, 4294967168  ;;  %s241_s4 = sand.u32 1, %s990_s18   ;;  %s245_s19 = scalar_lea.vmem [#allocation8], %s1154_s8 }
  0x74   : > { %s242_s11 = scalar_lea.sflag [#allocation9], %s241_s4 }
  0x75   : > { %900 = dma.done.wait (%p1255_p0), %s242_s11, 256  }
  0x76   : > { %902 = vsyncadd (%p1255_p0), %s242_s11, 4294967040  ;;  %vm291_vm0 = vcmask 7168   ;;  %v934_v0 = vmov 0.0   ;;  %vm935_vm1 = vmmov 0   ;;  %v297_v1 = vld [vmem:[%s245_s19] sm:$0xff]  ;;  %v295_v2 = vld [vmem:[%s236_s16] sm:$0xff] }
  0x77   : > { %293 = vst.msk [vmem:[#allocation3] sm:$0xff] %vm291_vm0, %v934_v0  ;;  %659 = vmatprep.subr.mxu0 %v934_v0  ;;  %661 = vmatprep.mubr.msk.f32.mxu0 %vm935_vm1, %v934_v0  ;;  %v296_v3 = vmul.f32 0.17677669, %v295_v2  ;;  %v936_v4 = vmov -1e+30   ;;  %vm370_vm2 = vcmask 64512  }
  0x78   : > { %664 = vmatprep.subr.mxu1 %v934_v0  ;;  %666 = vmatprep.mubr.msk.f32.mxu1 %vm935_vm1, %v934_v0  ;;  %292 = vst.msk [vmem:[#allocation2] sm:$0xff] %vm291_vm0, %v936_v4  ;;  %v937_v8 = vmov 0   ;;  %s254_s18 = scalar_lea.vmem [#allocation10], %s1154_s8  ;;  %s652_s24 = sshll.u32 %s921_s15, 7 }
  0x79   : > { %660 = vmatpush3.xpose.msra.mxu0 %v297_v1  ;;  %745 = vset.pattern.permute.xlu0 %v937_v8  ;;  %v298_v13 = vld [vmem:[%s254_s18] sm:$0xff]  ;;  %s286_s7 = scalar_lea.vmem [#allocation11], %s1154_s8  ;;  %s1181_s9 = scalar_lea.hbm %s1233_s3, %s652_s24 }
  0x7a   : > { %746 = vset.pattern.permute.xlu1 %v937_v8  ;;  %665 = vmatpush3.msra.mxu1 %v298_v13  ;;  %s507_s20 = sshll.u32 %s286_s7, 4  ;;  %s493_s22 = scalar_lea.sflag [#allocation7], %s1151_s21  ;;  %s1183_s20 = int_to_ptr.vmem [resolvable:$true] %s507_s20 }
  0x7b   : > { %s843_s28 = scalar_lea.vmem %s1183_s20, 128  ;;  %p1256_p10 = scmp.ne.s32.totalorder %s1244_s25, 0 }
  0x7c   : > { %662 = vmatmul.mubr.f32.vlgmr.msra.gmra.mrb[0].mxu0 %v296_v3  ;;  %p844_p4 = scmp.ne.s32.totalorder %s1183_s20, %s843_s28  ;;  %s938_s15 = smov [#allocation11]  }
  0x7d   : > { %s847_s30 = sshll.u32 %s938_s15, 4  ;;  %s848_s30 = int_to_ptr.vmem [resolvable:$false] %s847_s30 }
  0x7e   : > { %v386_v21 = vld [vmem:[#allocation3] sm:$0xff]  ;;  %p845_p12 = pnand %p844_p4, %p1256_p10  ;;  %s849_s1 = scalar_lea.vmem %s848_s30, 256 }
  0x7f   : > { %v369_v9 = vld [vmem:[#allocation2] sm:$0xff]  ;;  %p850_p8 = scmp.lt.s32.totalorder %s1183_s20, %s848_s30  ;;  %p851_p9 = scmp.lt.s32.totalorder %s849_s1, %s843_s28 }
  0x80   : > { %p846_p1 = pneg %p845_p12 }
  0x81   : > { %p852_p6 = por %p851_p9, %p850_p8 }
  0x83   : > { %p853_p13 = pnand %p852_p6, %p846_p1 }
 0x14f   : > { %v365_v5 = vpop.f32.mrb[0].mxu0 }
 0x150   : > { %v663_v6 = vpop.f32.mrb[1].mxu0  ;;  %v371_v7 = vsel %vm370_vm2, %v365_v5, -inf }
 0x151   : > { %372 = vmax.xlane.f32.xlu0 %v371_v7 }
 0x1de   : > { %v373_v10 = vpop.xlane.xlu0 %372 }
 0x1df   : > { %v374_v11 = vmax.f32 %v369_v9, %v373_v10 }
 0x1e1   : > { %v375_v12 = vsub.f32 %v369_v9, %v374_v11  ;;  %476 = vst.msk [vmem:[#allocation2] sm:$0xff] %vm291_vm0, %v374_v11  ;;  %380 = vperm.xlu0 %745, %v374_v11  }
 0x1e3   : > { %v376_v19 = vmul.f32 1.442695, %v375_v12 }
 0x260   : > { %v381_v14 = vpop.permute.xlu0 %380 }
 0x261   : > { %v383_v15 = vsub.f32 %v365_v5, %v381_v14 }
 0x263   : > { %v384_v16 = vmul.f32 1.442695, %v383_v15 }
 0x265   : > { %747 = vpow2.f32 %v384_v16 }
 0x266   : > { %749 = vpow2.f32 %v376_v19 }
 0x26f   : > { %v748_v17 = vpop.eup %747 }
 0x270   : > { %667 = vmatmul.mubr.msk.f32.vlgmr.msra.gmra.mrb[0].mxu1 %vm370_vm2, %v748_v17  ;;  %v388_v18 = vsel %vm370_vm2, %v748_v17, 0.0  ;;  %v750_v20 = vpop.eup %749 }
 0x271   : > { %389 = vadd.xlane.f32.xlu1 %v388_v18  ;;  %v387_v22 = vmul.f32 %v750_v20, %v386_v21 }
 0x282   : > { %397 = vperm.xlu1 %746, %v750_v20  }
 0x2fe   : > { %v390_v23 = vpop.xlane.xlu1 %389 }
 0x2ff   : > { %v391_v24 = vadd.f32 %v390_v23, %v387_v22 }
 0x301   : > { %393 = vst.msk [vmem:[#allocation3] sm:$0xff] %vm291_vm0, %v391_v24 }
 0x302   : > { %v398_v30 = vpop.permute.xlu1 %397 }
 0x303   : > { %v400_v31 = vmul.f32 0.0, %v398_v30 }
 0x308   : > { %v480_v25 = vld [vmem:[#allocation3] sm:$0xff] }
 0x309   : > { %vm481_vm3 = vcmp.eq.f32.partialorder %v480_v25, 0.0 }
 0x30a   : > { %v482_v26 = vsel %vm481_vm3, 1.0, %v480_v25 }
 0x30b   : > { %751 = vrcp.f32 %v482_v26 }
 0x315   : > { %v752_v27 = vpop.eup %751 }
 0x316   : > { %487 = vperm.xlu1 %746, %v752_v27  }
 0x343   : > { %v470_v28 = vpop.f32.mrb[0].mxu1 }
 0x344   : > { %v668_v29 = vpop.f32.mrb[1].mxu1  ;;  %v474_v32 = vadd.f32 %v470_v28, %v400_v31 }
 0x395   : > { %v488_v33 = vpop.permute.xlu1 %487 }
 0x396   : > { %v490_v34 = vmul.f32 %v488_v33, %v474_v32 }
 0x398   : > { %491 = vst [vmem:[%s286_s7] sm:$0xff] %v490_v34 }
 0x399   : > { %856 = shalt.err (!%p853_p13)
}
 0x39a   : > { %s857_s29 = scalar_lea.hbm %s1181_s9, 128  ;;  %s861_s21 = scalar_lea.hbm %s1233_s3, 256 }
 0x39b   : > { %p858_p11 = scmp.ne.s32.totalorder %s1181_s9, %s857_s29  ;;  %p862_p7 = scmp.lt.u32.totalorder %s1181_s9, %s1233_s3 }
 0x39c   : > { %p863_p3 = scmp.lt.u32.totalorder %s861_s21, %s857_s29  ;;  %p865_p4 = scmp.lt.u32.totalorder %s857_s29, %s1181_s9 }
 0x39d   : > { %p859_p2 = pnand %p858_p11, %p1256_p10 }
 0x39e   : > { %p864_p0 = por %p863_p3, %p862_p7 }
 0x39f   : > { %p860_p5 = pneg %p859_p2 }
 0x3a0   : > { %p866_p12 = por %p865_p4, %p864_p0 }
 0x3a2   : > { %p867_p1 = pnand %p866_p12, %p860_p5 }
 0x3a4   : > { %870 = shalt.err (!%p867_p1)
}
 0x3a5   : > { %675 = dma.vmem_to_hbm [thread:$0]  (%p1256_p10), %s1183_s20, 128, %s1181_s9, %s493_s22  }
 0x3a6 PF: > { %s519_s16 = sand.u32 1, %s909_s12   ;;  %p1257_p8 = scmp.ne.s32.totalorder %s1246_s27, 0 }
 0x3a7   : > { %p1258_p9 = scmp.ge.s32.totalorder %s929_s17, 2  ;;  %s520_s4 = scalar_lea.sflag [#allocation7], %s519_s16 }
 0x3a9   : > { %p688_p6 = pnand %p1258_p9, %p1257_p8 }
 0x3ab   : > { %904 = dma.done.wait (!%p688_p6), %s520_s4, 128  }
 0x3ac   : > { %906 = vsyncadd (!%p688_p6), %s520_s4, 4294967168  ;;  %s22_s17 = sadd.s32 1, %s929_s17   ;;  %s1259_s25 = sld [smem:[#allocation17_spill]] }
 0x3ad   : > { %p19_p13 = scmp.ge.s32.totalorder %s22_s17, 4   ;;  %s1260_s15 = sld [smem:[#allocation15_spill]] }
 0x3ae   : > { %s1261_s16 = sld [smem:[#allocation16_spill]]  ;;  %s1262_s12 = smov %s913_s13 }
 0x3af   : > { %s1263_s13 = smov %s917_s14  ;;  %21 = sbr.rel (!%p19_p13) target bundleno = 10 (0xa), region = 109 }
 0x3b2   : > { %s1264_s14 = smov %s1259_s25 }
 0x3b6   :  { %525 = vsyncpa [#allocation6], 1 }
 0x3b7   :  { %527 = vsyncpa [#allocation6 + $0x1], 1 }
 0x3b8   :  { %528 = vsyncpa [#allocation9], 1 }
 0x3b9   :  { %530 = vsyncpa [#allocation9 + $0x1], 1 }
 0x3ba   :  { %531 = vsyncpa [#allocation7], 1 }
 0x3bb   :  { %533 = vsyncpa [#allocation7 + $0x1], 1 }

</bundles_post_ra>
